<compile_context>
chip_gen: v6e
topology: v6e:2x2x1
jax: 0.10.0
libtpu: 0.0.40
codegen_flags: <defaults>
</compile_context>

<pallas_src>
import jax
import jax.numpy as jnp
from jax.experimental import pallas as pl
from jax.experimental.pallas import tpu as pltpu

DIM = 128          # "dim" of the optimizer (lane-friendly small size)
EPS = 1e-10        # matches self.eps = torch.tensor(1e-10)

# ---- weight-slab layout (single (24, 128) f32 array) -------------------------------------
#   rows 0:16, cols   0: 16  U2 (16,16)
#   rows 0:16, cols  16: 32  U3
#   rows 0:16, cols  32: 48  U4
#   rows 0:16, cols  48: 64  U5
#   rows 0:16, cols  64: 72  U1 padded: cols 64:70 = U1 (16,6), col 70 = conv1 bias, col 71 = 0
#   rows 0:8,  cols  80: 88  W1.T padded (5->8 rows); row 8, cols 80:88 = b1
#   rows 0:8,  cols  88: 96  W2 (8,8)
#   rows 0:8,  cols  96:100  W3.T (8,4);               row 8, cols 96:100 = b3
#   rows 0:8,  col  104      b2 (column)
#   rows 0:16, cols 105:109  conv biases c2..c5 (one lane each)
#   row  0,    col  109      conv6 bias scalar
#   rows 0:8,  cols 112:128  U6 padded (1->8 rows)
#   row 16,    cols 0:dim    per-coordinate "gradient" parameter
#   row 17,    cols 0:dim    per-coordinate "extrapolation" parameter


def _nn_optimizer_kernel(loss_ref, state_ref, w_ref, o_ref):
    f32 = jnp.float32
    bf16 = jnp.bfloat16

    st = state_ref[...]                      # (3, dim) f32: [grad, x_prev, x_curr]
    dim = st.shape[1]
    g = st[0:1, :]
    xp = st[1:2, :]
    xc = st[2:3, :]
    diff = xc - xp

    pg = w_ref[16:17, 0:dim]                 # learned per-coordinate "gradient" param
    pe = w_ref[17:18, 0:dim]                 # learned per-coordinate "extrapolation" param

    ones_row = jnp.ones_like(g)
    zeros_row = jnp.zeros_like(g)

    # ---- norm/coefficient-independent half of conv layer 1: issue to the MXU right away ----
    # U1 columns 4:8 pair with [x_prev, x_curr, ones (bias), zeros (pad)].
    stack_b = jnp.concatenate([xp, xc, ones_row, zeros_row], axis=0)            # (4, dim)
    wu1_b = w_ref[0:16, 68:72].astype(bf16)                                     # (16, 4)
    part_b = jnp.dot(wu1_b, stack_b.astype(bf16), preferred_element_type=f32)   # (16, dim)

    # ---- fused reductions: one (3, dim) lane reduction for ||g||^2, ||diff||^2, <g,diff> ----
    prod3 = jnp.concatenate([g * g, diff * diff, g * diff], axis=0)             # (3, dim)
    sums = jnp.sum(prod3, axis=1, keepdims=True)                                # (3, 1)
    gsq = sums[0:1, :]
    dsq = sums[1:2, :]
    gdot = sums[2:3, :]

    gnorm = jnp.sqrt(gsq)
    dnorm = jnp.sqrt(dsq)
    # torch: divide only if norm > eps (dead-branch inf from rsqrt(0) is discarded by where)
    inv_g = jnp.where(gnorm > EPS, jax.lax.rsqrt(gsq), 1.0)
    inv_d = jnp.where(dnorm > EPS, jax.lax.rsqrt(dsq), 1.0)
    gd = gdot * inv_g * inv_d                                                   # <gn, dn>

    # ---- features: 4 of 5 are logs -> one vectorized log over an (8,1) column -------------
    sub8 = jax.lax.broadcasted_iota(jnp.int32, (8, 1), 0)
    loss_c = loss_ref[0]                     # raw loss(x_curr), log taken in-kernel (EUP)
    loss_p = loss_ref[1]                     # raw loss(x_prev)
    pre = (jnp.where(sub8 == 0, gnorm, 0.0)
           + jnp.where(sub8 == 1, dnorm, 0.0)
           + jnp.where(sub8 == 3, loss_c - 1.0, 0.0)
           + jnp.where(sub8 == 4, loss_p - 1.0, 0.0)
           + 1.0)                            # rows: [1+|g|, 1+|d|, 1, loss_c, loss_p, 1, 1, 1]
    f_col = jnp.log(pre) + jnp.where(sub8 == 2, gd, 0.0)                        # (8, 1)

    # ---- coefficient MLP 5 -> 8 -> 8 -> 4 (VPU/XLU work, hidden under part_b's MXU time) --
    wc1 = w_ref[0:8, 80:88]                  # W1.T padded
    bc1 = w_ref[8:9, 80:88]
    wc2 = w_ref[0:8, 88:96]                  # W2
    bc2 = w_ref[0:8, 104:105]
    wc3 = w_ref[0:8, 96:100]                 # W3.T
    bc3 = w_ref[8:9, 96:100]

    h1 = jnp.maximum(jnp.sum(f_col * wc1, axis=0, keepdims=True) + bc1, 0.0)    # (1, 8)
    h2 = jnp.maximum(jnp.sum(wc2 * h1, axis=1, keepdims=True) + bc2, 0.0)       # (8, 1)
    c4 = jnp.sum(h2 * wc3, axis=0, keepdims=True) + bc3                         # (1, 4)

    # ---- fold coefficients AND 1/norm scales into the 4 data columns of conv weight 1 -----
    lane4 = jax.lax.broadcasted_iota(jnp.int32, (1, 4), 1)
    inv4 = jnp.where((lane4 == 0) | (lane4 == 2), inv_g, inv_d)                 # [1/|g|,1/|d|,1/|g|,1/|d|]
    scale4 = c4 * inv4                                                          # (1, 4)

    # stack rows carry the UN-normalized vectors; normalization lives in scale4.
    stack_a = jnp.concatenate([pg * g, pe * diff, g, diff], axis=0)             # (4, dim)
    wu1_a = (w_ref[0:16, 64:68] * scale4).astype(bf16)                          # (16, 4)
    part_a = jnp.dot(wu1_a, stack_a.astype(bf16), preferred_element_type=f32)   # (16, dim)

    h = jnp.maximum(part_a + part_b, 0.0)                                       # (16, dim) f32

    # ---- conv layers 2..5: bf16 MXU operands, f32 accumulate, ReLU ------------------------
    for col_lo, bias_col in ((0, 105), (16, 106), (32, 107), (48, 108)):
        w = w_ref[0:16, col_lo:col_lo + 16].astype(bf16)                        # (16, 16)
        b = w_ref[0:16, bias_col:bias_col + 1]                                  # (16, 1) f32
        h = jnp.maximum(jnp.dot(w, h.astype(bf16), preferred_element_type=f32) + b, 0.0)

    # ---- conv layer 6 (no ReLU): U6 padded to (8, 16), bias only at row 0 ------------------
    wu6 = w_ref[0:8, 112:128].astype(bf16)
    bu6 = w_ref[0:8, 109:110]
    d = jnp.dot(wu6, h.astype(bf16), preferred_element_type=f32) + bu6          # (8, dim)

    # output = current_state[-1] + direction
    o_ref[...] = xc + d[0:1, :]


def init_params(key, dim):
    """Deterministic synthetic parameters matching the torch module's shapes."""
    keys = jax.random.split(key, 18)

    def w(k, shape, scale=0.3):
        return scale * jax.random.normal(k, shape, dtype=jnp.float32)

    return {
        "extrapolation": 0.001 * jnp.ones((dim,), jnp.float32),
        "gradient": 0.001 * jnp.ones((dim,), jnp.float32),
        # coefficients: Linear(5,8), Linear(8,8), Linear(8,4) — torch weight layout (out, in)
        "W1": w(keys[0], (8, 5)),  "b1": w(keys[1], (8,), 0.1),
        "W2": w(keys[2], (8, 8)),  "b2": w(keys[3], (8,), 0.1),
        "W3": w(keys[4], (4, 8)),  "b3": w(keys[5], (4,), 0.1),
        # update_layer: 1x1 convs, weights stored as (C_out, C_in)
        "U1": w(keys[6], (16, 6)),   "c1": w(keys[7], (16,), 0.1),
        "U2": w(keys[8], (16, 16)),  "c2": w(keys[9], (16,), 0.1),
        "U3": w(keys[10], (16, 16)), "c3": w(keys[11], (16,), 0.1),
        "U4": w(keys[12], (16, 16)), "c4": w(keys[13], (16,), 0.1),
        "U5": w(keys[14], (16, 16)), "c5": w(keys[15], (16,), 0.1),
        "U6": w(keys[16], (1, 16)),  "c6": w(keys[17], (1,), 0.1),
    }


def pack_params(p, dim):
    """Pack ALL weights/biases AND the per-coordinate params into one (24, 128) f32 slab."""
    assert dim <= 128, "per-coordinate params live in the 128-wide slab rows"
    slab = jnp.zeros((24, 128), jnp.float32)
    # conv stack weights
    slab = slab.at[0:16, 0:16].set(p["U2"])
    slab = slab.at[0:16, 16:32].set(p["U3"])
    slab = slab.at[0:16, 32:48].set(p["U4"])
    slab = slab.at[0:16, 48:64].set(p["U5"])
    slab = slab.at[0:16, 64:70].set(p["U1"])       # (16, 6) real channels
    slab = slab.at[0:16, 70].set(p["c1"])          # conv1 bias -> column 6 (pairs with ones row)
    # coefficient MLP
    slab = slab.at[0:5, 80:88].set(p["W1"].T)      # (5, 8) padded to (8, 8)
    slab = slab.at[8, 80:88].set(p["b1"])
    slab = slab.at[0:8, 88:96].set(p["W2"])
    slab = slab.at[0:8, 96:100].set(p["W3"].T)     # (8, 4)
    slab = slab.at[8, 96:100].set(p["b3"])
    slab = slab.at[0:8, 104].set(p["b2"])
    # conv biases 2..6
    slab = slab.at[0:16, 105].set(p["c2"])
    slab = slab.at[0:16, 106].set(p["c3"])
    slab = slab.at[0:16, 107].set(p["c4"])
    slab = slab.at[0:16, 108].set(p["c5"])
    slab = slab.at[0, 109].set(p["c6"][0])
    # final conv weight, padded (1,16) -> (8,16)
    slab = slab.at[0, 112:128].set(p["U6"][0])
    # per-coordinate learned params (replaces the former separate pvec input)
    slab = slab.at[16, 0:dim].set(p["gradient"])
    slab = slab.at[17, 0:dim].set(p["extrapolation"])
    return slab


def nn_optimizer_forward(state, losses, wslab):
    """state: (3, dim) f32 = [grad, x_prev, x_curr]; losses: (2,) f32 = [loss_curr, loss_prev]."""
    dim = state.shape[1]
    assert dim == 128, "this single-tile kernel targets dim == 128"  # TODO(synk): grid-tile larger dim
    out = pl.pallas_call(
        _nn_optimizer_kernel,
        out_shape=jax.ShapeDtypeStruct((1, dim), jnp.float32),
        in_specs=[
            pl.BlockSpec(memory_space=pltpu.MemorySpace.SMEM),   # raw losses (2,)
            pl.BlockSpec(memory_space=pltpu.MemorySpace.VMEM),   # state (3, dim)
            pl.BlockSpec(memory_space=pltpu.MemorySpace.VMEM),   # weight slab (24, 128)
        ],
        out_specs=pl.BlockSpec(memory_space=pltpu.MemorySpace.VMEM),
    )(losses, state, wslab)
    return out.reshape(dim)


def reference_forward(grad, x_prev, x_curr, loss_curr, loss_prev, p):
    """Pure-JAX f32 mirror of the torch forward for verification."""
    gn = jnp.linalg.norm(grad)
    g = jnp.where(gn > EPS, grad / gn, grad)
    diff = x_curr - x_prev
    dn = jnp.linalg.norm(diff)
    d = jnp.where(dn > EPS, diff / dn, diff)

    feats = jnp.stack([jnp.log(1.0 + gn), jnp.log(1.0 + dn), jnp.dot(g, d),
                       jnp.log(loss_curr), jnp.log(loss_prev)])
    h = jnp.maximum(p["W1"] @ feats + p["b1"], 0.0)
    h = jnp.maximum(p["W2"] @ h + p["b2"], 0.0)
    coef = p["W3"] @ h + p["b3"]

    X = jnp.stack([coef[0] * p["gradient"] * g,
                   coef[1] * p["extrapolation"] * d,
                   coef[2] * g,
                   coef[3] * d,
                   x_prev,
                   x_curr], axis=0)                       # (6, dim)
    H = X
    for U, c in ((p["U1"], p["c1"]), (p["U2"], p["c2"]), (p["U3"], p["c3"]),
                 (p["U4"], p["c4"]), (p["U5"], p["c5"])):
        H = jnp.maximum(U @ H + c[:, None], 0.0)
    direction = (p["U6"] @ H + p["c6"][:, None])[0]       # (dim,)
    return x_curr + direction


if __name__ == "__main__":
    key = jax.random.PRNGKey(0)
    k_prev, k_curr, k_params = jax.random.split(key, 3)

    # Synthetic optimization state: quadratic objective f(x) = 0.5 * ||x||^2
    x_prev = jax.random.normal(k_prev, (DIM,), dtype=jnp.float32)   # current_state[0]
    x_curr = jax.random.normal(k_curr, (DIM,), dtype=jnp.float32)   # current_state[1]
    grad = x_curr                                                   # grad of f at x_curr
    loss_curr = 0.5 * jnp.sum(x_curr * x_curr)
    loss_prev = 0.5 * jnp.sum(x_prev * x_prev)

    params = init_params(k_params, DIM)
    wslab = pack_params(params, DIM)

    # Persistent stacked buffers (kept across steps by a real training loop; no per-step
    # wrapper stack/log launches — the kernel consumes them directly).
    state = jnp.stack([grad, x_prev, x_curr], axis=0).astype(jnp.float32)   # (3, dim)
    losses = jnp.stack([loss_curr, loss_prev]).astype(jnp.float32)          # (2,)

    fwd = jax.jit(nn_optimizer_forward)
    out = jax.block_until_ready(fwd(state, losses, wslab))

    ref = reference_forward(grad, x_prev, x_curr, loss_curr, loss_prev, params)
    max_err = float(jnp.max(jnp.abs(out - ref)))
    # Tolerance loosened from 1e-2 (pure-f32) to 5e-2: the six conv matmuls now use bf16
    # operands (f32 accumulation), which is the expected numerical regime on the TPU MXU.
    if max_err > 5e-2:
        raise AssertionError(f"Pallas kernel mismatch vs reference, max abs err = {max_err}")

    print("KERNEL_OK")
</pallas_src>

<mosaic_0001>
module attributes {stable_mosaic.version = 11 : i64} {
  func.func @_nn_optimizer_kernel(%arg0: memref<2xf32, #tpu.memory_space<smem>>, %arg1: memref<3x128xf32, #tpu.memory_space<vmem>>, %arg2: memref<24x128xf32, #tpu.memory_space<vmem>>, %arg3: memref<1x128xf32, #tpu.memory_space<vmem>>) attributes {dimension_semantics = [], scalar_prefetch = 0 : i64, scratch_operands = 0 : i64, tpu.core_type = #tpu.core_type<tc>} {
    %c0 = arith.constant 0 : index
    %c0_0 = arith.constant 0 : index
    %0 = vector.load %arg1[%c0, %c0_0] : memref<3x128xf32, #tpu.memory_space<vmem>>, vector<3x128xf32>
    %1 = vector.extract_strided_slice %0 {offsets = [0, 0], sizes = [1, 128], strides = [1, 1]} : vector<3x128xf32> to vector<1x128xf32>
    %2 = vector.extract_strided_slice %0 {offsets = [1, 0], sizes = [1, 128], strides = [1, 1]} : vector<3x128xf32> to vector<1x128xf32>
    %3 = vector.extract_strided_slice %0 {offsets = [2, 0], sizes = [1, 128], strides = [1, 1]} : vector<3x128xf32> to vector<1x128xf32>
    %4 = arith.subf %3, %2 : vector<1x128xf32>
    %c16 = arith.constant 16 : index
    %c0_1 = arith.constant 0 : index
    %5 = vector.load %arg2[%c16, %c0_1] : memref<24x128xf32, #tpu.memory_space<vmem>>, vector<1x128xf32>
    %c17 = arith.constant 17 : index
    %c0_2 = arith.constant 0 : index
    %6 = vector.load %arg2[%c17, %c0_2] : memref<24x128xf32, #tpu.memory_space<vmem>>, vector<1x128xf32>
    %cst = arith.constant 1.000000e+00 : f32
    %7 = vector.broadcast %cst : f32 to vector<1x128xf32>
    %cst_3 = arith.constant 0.000000e+00 : f32
    %8 = vector.broadcast %cst_3 : f32 to vector<1x128xf32>
    %9 = tpu.concatenate %2, %3, %7, %8 in 0 : vector<1x128xf32>, vector<1x128xf32>, vector<1x128xf32>, vector<1x128xf32> -> vector<4x128xf32>
    %c0_4 = arith.constant 0 : index
    %c68 = arith.constant 68 : index
    %10 = vector.load %arg2[%c0_4, %c68] : memref<24x128xf32, #tpu.memory_space<vmem>>, vector<16x4xf32>
    %11 = arith.truncf %10 : vector<16x4xf32> to vector<16x4xbf16>
    %12 = arith.truncf %9 : vector<4x128xf32> to vector<4x128xbf16>
    %cst_5 = arith.constant dense<0.000000e+00> : vector<16x128xf32>
    %13 = tpu.matmul %11, %12, %cst_5 {dimension_numbers = #tpu.dot_dimension_numbers<[1], [0], [0], [1], [0, 0, 1, 1], [], []>} : vector<16x4xbf16>, vector<4x128xbf16>, vector<16x128xf32> -> vector<16x128xf32>
    %14 = arith.mulf %1, %1 : vector<1x128xf32>
    %15 = arith.mulf %4, %4 : vector<1x128xf32>
    %16 = arith.mulf %1, %4 : vector<1x128xf32>
    %17 = tpu.concatenate %14, %15, %16 in 0 : vector<1x128xf32>, vector<1x128xf32>, vector<1x128xf32> -> vector<3x128xf32>
    %cst_6 = arith.constant dense<0.000000e+00> : vector<3xf32>
    %18 = vector.multi_reduction <add>, %17, %cst_6 [1] : vector<3x128xf32> to vector<3xf32>
    %19 = vector.shape_cast %18 : vector<3xf32> to vector<3x1xf32>
    %20 = vector.extract_strided_slice %19 {offsets = [0, 0], sizes = [1, 1], strides = [1, 1]} : vector<3x1xf32> to vector<1x1xf32>
    %21 = vector.extract_strided_slice %19 {offsets = [1, 0], sizes = [1, 1], strides = [1, 1]} : vector<3x1xf32> to vector<1x1xf32>
    %22 = vector.extract_strided_slice %19 {offsets = [2, 0], sizes = [1, 1], strides = [1, 1]} : vector<3x1xf32> to vector<1x1xf32>
    %23 = math.sqrt %20 : vector<1x1xf32>
    %24 = math.sqrt %21 : vector<1x1xf32>
    %cst_7 = arith.constant 1.000000e-10 : f32
    %25 = vector.broadcast %cst_7 : f32 to vector<1x1xf32>
    %26 = arith.cmpf ogt, %23, %25 : vector<1x1xf32>
    %27 = math.rsqrt %20 : vector<1x1xf32>
    %cst_8 = arith.constant 1.000000e+00 : f32
    %28 = vector.broadcast %cst_8 : f32 to vector<1x1xf32>
    %29 = arith.select %26, %27, %28 : vector<1x1xi1>, vector<1x1xf32>
    %cst_9 = arith.constant 1.000000e-10 : f32
    %30 = vector.broadcast %cst_9 : f32 to vector<1x1xf32>
    %31 = arith.cmpf ogt, %24, %30 : vector<1x1xf32>
    %32 = math.rsqrt %21 : vector<1x1xf32>
    %cst_10 = arith.constant 1.000000e+00 : f32
    %33 = vector.broadcast %cst_10 : f32 to vector<1x1xf32>
    %34 = arith.select %31, %32, %33 : vector<1x1xi1>, vector<1x1xf32>
    %35 = arith.mulf %22, %29 : vector<1x1xf32>
    %36 = arith.mulf %35, %34 : vector<1x1xf32>
    %37 = tpu.iota {dimensions = array<i32: 0>} : vector<8x1xi32>
    %c0_11 = arith.constant 0 : index
    %38 = memref.load %arg0[%c0_11] : memref<2xf32, #tpu.memory_space<smem>>
    %c1 = arith.constant 1 : index
    %39 = memref.load %arg0[%c1] : memref<2xf32, #tpu.memory_space<smem>>
    %c0_i32 = arith.constant 0 : i32
    %40 = vector.broadcast %c0_i32 : i32 to vector<8x1xi32>
    %41 = arith.cmpi eq, %37, %40 : vector<8x1xi32>
    %cst_12 = arith.constant 0.000000e+00 : f32
    %42 = vector.shape_cast %23 : vector<1x1xf32> to vector<1x1xf32>
    %43 = vector.broadcast %42 : vector<1x1xf32> to vector<8x1xf32>
    %44 = vector.broadcast %cst_12 : f32 to vector<8x1xf32>
    %45 = arith.select %41, %43, %44 : vector<8x1xi1>, vector<8x1xf32>
    %c1_i32 = arith.constant 1 : i32
    %46 = vector.broadcast %c1_i32 : i32 to vector<8x1xi32>
    %47 = arith.cmpi eq, %37, %46 : vector<8x1xi32>
    %cst_13 = arith.constant 0.000000e+00 : f32
    %48 = vector.shape_cast %24 : vector<1x1xf32> to vector<1x1xf32>
    %49 = vector.broadcast %48 : vector<1x1xf32> to vector<8x1xf32>
    %50 = vector.broadcast %cst_13 : f32 to vector<8x1xf32>
    %51 = arith.select %47, %49, %50 : vector<8x1xi1>, vector<8x1xf32>
    %52 = arith.addf %45, %51 : vector<8x1xf32>
    %c3_i32 = arith.constant 3 : i32
    %53 = vector.broadcast %c3_i32 : i32 to vector<8x1xi32>
    %54 = arith.cmpi eq, %37, %53 : vector<8x1xi32>
    %cst_14 = arith.constant 1.000000e+00 : f32
    %55 = arith.subf %38, %cst_14 : f32
    %cst_15 = arith.constant 0.000000e+00 : f32
    %56 = vector.broadcast %55 : f32 to vector<8x1xf32>
    %57 = vector.broadcast %cst_15 : f32 to vector<8x1xf32>
    %58 = arith.select %54, %56, %57 : vector<8x1xi1>, vector<8x1xf32>
    %59 = arith.addf %52, %58 : vector<8x1xf32>
    %c4_i32 = arith.constant 4 : i32
    %60 = vector.broadcast %c4_i32 : i32 to vector<8x1xi32>
    %61 = arith.cmpi eq, %37, %60 : vector<8x1xi32>
    %cst_16 = arith.constant 1.000000e+00 : f32
    %62 = arith.subf %39, %cst_16 : f32
    %cst_17 = arith.constant 0.000000e+00 : f32
    %63 = vector.broadcast %62 : f32 to vector<8x1xf32>
    %64 = vector.broadcast %cst_17 : f32 to vector<8x1xf32>
    %65 = arith.select %61, %63, %64 : vector<8x1xi1>, vector<8x1xf32>
    %66 = arith.addf %59, %65 : vector<8x1xf32>
    %cst_18 = arith.constant 1.000000e+00 : f32
    %67 = vector.broadcast %cst_18 : f32 to vector<8x1xf32>
    %68 = arith.addf %66, %67 : vector<8x1xf32>
    %69 = math.log %68 : vector<8x1xf32>
    %c2_i32 = arith.constant 2 : i32
    %70 = vector.broadcast %c2_i32 : i32 to vector<8x1xi32>
    %71 = arith.cmpi eq, %37, %70 : vector<8x1xi32>
    %cst_19 = arith.constant 0.000000e+00 : f32
    %72 = vector.shape_cast %36 : vector<1x1xf32> to vector<1x1xf32>
    %73 = vector.broadcast %72 : vector<1x1xf32> to vector<8x1xf32>
    %74 = vector.broadcast %cst_19 : f32 to vector<8x1xf32>
    %75 = arith.select %71, %73, %74 : vector<8x1xi1>, vector<8x1xf32>
    %76 = arith.addf %69, %75 : vector<8x1xf32>
    %c0_20 = arith.constant 0 : index
    %c80 = arith.constant 80 : index
    %77 = vector.load %arg2[%c0_20, %c80] : memref<24x128xf32, #tpu.memory_space<vmem>>, vector<8x8xf32>
    %c8 = arith.constant 8 : index
    %c80_21 = arith.constant 80 : index
    %78 = vector.load %arg2[%c8, %c80_21] : memref<24x128xf32, #tpu.memory_space<vmem>>, vector<1x8xf32>
    %c0_22 = arith.constant 0 : index
    %c88 = arith.constant 88 : index
    %79 = vector.load %arg2[%c0_22, %c88] : memref<24x128xf32, #tpu.memory_space<vmem>>, vector<8x8xf32>
    %c0_23 = arith.constant 0 : index
    %c104 = arith.constant 104 : index
    %80 = vector.load %arg2[%c0_23, %c104] : memref<24x128xf32, #tpu.memory_space<vmem>>, vector<8x1xf32>
    %c0_24 = arith.constant 0 : index
    %c96 = arith.constant 96 : index
    %81 = vector.load %arg2[%c0_24, %c96] : memref<24x128xf32, #tpu.memory_space<vmem>>, vector<8x4xf32>
    %c8_25 = arith.constant 8 : index
    %c96_26 = arith.constant 96 : index
    %82 = vector.load %arg2[%c8_25, %c96_26] : memref<24x128xf32, #tpu.memory_space<vmem>>, vector<1x4xf32>
    %83 = vector.broadcast %76 : vector<8x1xf32> to vector<8x8xf32>
    %84 = arith.mulf %83, %77 : vector<8x8xf32>
    %cst_27 = arith.constant dense<0.000000e+00> : vector<8xf32>
    %85 = vector.multi_reduction <add>, %84, %cst_27 [0] : vector<8x8xf32> to vector<8xf32>
    %86 = vector.shape_cast %85 : vector<8xf32> to vector<1x8xf32>
    %87 = arith.addf %86, %78 : vector<1x8xf32>
    %cst_28 = arith.constant 0.000000e+00 : f32
    %88 = vector.broadcast %cst_28 : f32 to vector<1x8xf32>
    %89 = arith.maximumf %87, %88 : vector<1x8xf32>
    %90 = vector.broadcast %89 : vector<1x8xf32> to vector<8x8xf32>
    %91 = arith.mulf %79, %90 : vector<8x8xf32>
    %cst_29 = arith.constant dense<0.000000e+00> : vector<8xf32>
    %92 = vector.multi_reduction <add>, %91, %cst_29 [1] : vector<8x8xf32> to vector<8xf32>
    %93 = vector.shape_cast %92 : vector<8xf32> to vector<8x1xf32>
    %94 = arith.addf %93, %80 : vector<8x1xf32>
    %cst_30 = arith.constant 0.000000e+00 : f32
    %95 = vector.broadcast %cst_30 : f32 to vector<8x1xf32>
    %96 = arith.maximumf %94, %95 : vector<8x1xf32>
    %97 = vector.broadcast %96 : vector<8x1xf32> to vector<8x4xf32>
    %98 = arith.mulf %97, %81 : vector<8x4xf32>
    %cst_31 = arith.constant dense<0.000000e+00> : vector<4xf32>
    %99 = vector.multi_reduction <add>, %98, %cst_31 [0] : vector<8x4xf32> to vector<4xf32>
    %100 = vector.shape_cast %99 : vector<4xf32> to vector<1x4xf32>
    %101 = arith.addf %100, %82 : vector<1x4xf32>
    %102 = tpu.iota {dimensions = array<i32: 1>} : vector<1x4xi32>
    %c0_i32_32 = arith.constant 0 : i32
    %103 = vector.broadcast %c0_i32_32 : i32 to vector<1x4xi32>
    %104 = arith.cmpi eq, %102, %103 : vector<1x4xi32>
    %c2_i32_33 = arith.constant 2 : i32
    %105 = vector.broadcast %c2_i32_33 : i32 to vector<1x4xi32>
    %106 = arith.cmpi eq, %102, %105 : vector<1x4xi32>
    %107 = arith.ori %104, %106 : vector<1x4xi1>
    %108 = vector.shape_cast %29 : vector<1x1xf32> to vector<1x1xf32>
    %109 = vector.broadcast %108 : vector<1x1xf32> to vector<1x4xf32>
    %110 = vector.shape_cast %34 : vector<1x1xf32> to vector<1x1xf32>
    %111 = vector.broadcast %110 : vector<1x1xf32> to vector<1x4xf32>
    %112 = arith.select %107, %109, %111 : vector<1x4xi1>, vector<1x4xf32>
    %113 = arith.mulf %101, %112 : vector<1x4xf32>
    %114 = arith.mulf %5, %1 : vector<1x128xf32>
    %115 = arith.mulf %6, %4 : vector<1x128xf32>
    %116 = tpu.concatenate %114, %115, %1, %4 in 0 : vector<1x128xf32>, vector<1x128xf32>, vector<1x128xf32>, vector<1x128xf32> -> vector<4x128xf32>
    %c0_34 = arith.constant 0 : index
    %c64 = arith.constant 64 : index
    %117 = vector.load %arg2[%c0_34, %c64] : memref<24x128xf32, #tpu.memory_space<vmem>>, vector<16x4xf32>
    %118 = vector.broadcast %113 : vector<1x4xf32> to vector<16x4xf32>
    %119 = arith.mulf %117, %118 : vector<16x4xf32>
    %120 = arith.truncf %119 : vector<16x4xf32> to vector<16x4xbf16>
    %121 = arith.truncf %116 : vector<4x128xf32> to vector<4x128xbf16>
    %cst_35 = arith.constant dense<0.000000e+00> : vector<16x128xf32>
    %122 = tpu.matmul %120, %121, %cst_35 {dimension_numbers = #tpu.dot_dimension_numbers<[1], [0], [0], [1], [0, 0, 1, 1], [], []>} : vector<16x4xbf16>, vector<4x128xbf16>, vector<16x128xf32> -> vector<16x128xf32>
    %123 = arith.addf %122, %13 : vector<16x128xf32>
    %cst_36 = arith.constant 0.000000e+00 : f32
    %124 = vector.broadcast %cst_36 : f32 to vector<16x128xf32>
    %125 = arith.maximumf %123, %124 : vector<16x128xf32>
    %c0_37 = arith.constant 0 : index
    %c0_38 = arith.constant 0 : index
    %126 = vector.load %arg2[%c0_37, %c0_38] : memref<24x128xf32, #tpu.memory_space<vmem>>, vector<16x16xf32>
    %127 = arith.truncf %126 : vector<16x16xf32> to vector<16x16xbf16>
    %c0_39 = arith.constant 0 : index
    %c105 = arith.constant 105 : index
    %128 = vector.load %arg2[%c0_39, %c105] : memref<24x128xf32, #tpu.memory_space<vmem>>, vector<16x1xf32>
    %129 = arith.truncf %125 : vector<16x128xf32> to vector<16x128xbf16>
    %cst_40 = arith.constant dense<0.000000e+00> : vector<16x128xf32>
    %130 = tpu.matmul %127, %129, %cst_40 {dimension_numbers = #tpu.dot_dimension_numbers<[1], [0], [0], [1], [0, 0, 1, 1], [], []>} : vector<16x16xbf16>, vector<16x128xbf16>, vector<16x128xf32> -> vector<16x128xf32>
    %131 = vector.broadcast %128 : vector<16x1xf32> to vector<16x128xf32>
    %132 = arith.addf %130, %131 : vector<16x128xf32>
    %cst_41 = arith.constant 0.000000e+00 : f32
    %133 = vector.broadcast %cst_41 : f32 to vector<16x128xf32>
    %134 = arith.maximumf %132, %133 : vector<16x128xf32>
    %c0_42 = arith.constant 0 : index
    %c16_43 = arith.constant 16 : index
    %135 = vector.load %arg2[%c0_42, %c16_43] : memref<24x128xf32, #tpu.memory_space<vmem>>, vector<16x16xf32>
    %136 = arith.truncf %135 : vector<16x16xf32> to vector<16x16xbf16>
    %c0_44 = arith.constant 0 : index
    %c106 = arith.constant 106 : index
    %137 = vector.load %arg2[%c0_44, %c106] : memref<24x128xf32, #tpu.memory_space<vmem>>, vector<16x1xf32>
    %138 = arith.truncf %134 : vector<16x128xf32> to vector<16x128xbf16>
    %cst_45 = arith.constant dense<0.000000e+00> : vector<16x128xf32>
    %139 = tpu.matmul %136, %138, %cst_45 {dimension_numbers = #tpu.dot_dimension_numbers<[1], [0], [0], [1], [0, 0, 1, 1], [], []>} : vector<16x16xbf16>, vector<16x128xbf16>, vector<16x128xf32> -> vector<16x128xf32>
    %140 = vector.broadcast %137 : vector<16x1xf32> to vector<16x128xf32>
    %141 = arith.addf %139, %140 : vector<16x128xf32>
    %cst_46 = arith.constant 0.000000e+00 : f32
    %142 = vector.broadcast %cst_46 : f32 to vector<16x128xf32>
    %143 = arith.maximumf %141, %142 : vector<16x128xf32>
    %c0_47 = arith.constant 0 : index
    %c32 = arith.constant 32 : index
    %144 = vector.load %arg2[%c0_47, %c32] : memref<24x128xf32, #tpu.memory_space<vmem>>, vector<16x16xf32>
    %145 = arith.truncf %144 : vector<16x16xf32> to vector<16x16xbf16>
    %c0_48 = arith.constant 0 : index
    %c107 = arith.constant 107 : index
    %146 = vector.load %arg2[%c0_48, %c107] : memref<24x128xf32, #tpu.memory_space<vmem>>, vector<16x1xf32>
    %147 = arith.truncf %143 : vector<16x128xf32> to vector<16x128xbf16>
    %cst_49 = arith.constant dense<0.000000e+00> : vector<16x128xf32>
    %148 = tpu.matmul %145, %147, %cst_49 {dimension_numbers = #tpu.dot_dimension_numbers<[1], [0], [0], [1], [0, 0, 1, 1], [], []>} : vector<16x16xbf16>, vector<16x128xbf16>, vector<16x128xf32> -> vector<16x128xf32>
    %149 = vector.broadcast %146 : vector<16x1xf32> to vector<16x128xf32>
    %150 = arith.addf %148, %149 : vector<16x128xf32>
    %cst_50 = arith.constant 0.000000e+00 : f32
    %151 = vector.broadcast %cst_50 : f32 to vector<16x128xf32>
    %152 = arith.maximumf %150, %151 : vector<16x128xf32>
    %c0_51 = arith.constant 0 : index
    %c48 = arith.constant 48 : index
    %153 = vector.load %arg2[%c0_51, %c48] : memref<24x128xf32, #tpu.memory_space<vmem>>, vector<16x16xf32>
    %154 = arith.truncf %153 : vector<16x16xf32> to vector<16x16xbf16>
    %c0_52 = arith.constant 0 : index
    %c108 = arith.constant 108 : index
    %155 = vector.load %arg2[%c0_52, %c108] : memref<24x128xf32, #tpu.memory_space<vmem>>, vector<16x1xf32>
    %156 = arith.truncf %152 : vector<16x128xf32> to vector<16x128xbf16>
    %cst_53 = arith.constant dense<0.000000e+00> : vector<16x128xf32>
    %157 = tpu.matmul %154, %156, %cst_53 {dimension_numbers = #tpu.dot_dimension_numbers<[1], [0], [0], [1], [0, 0, 1, 1], [], []>} : vector<16x16xbf16>, vector<16x128xbf16>, vector<16x128xf32> -> vector<16x128xf32>
    %158 = vector.broadcast %155 : vector<16x1xf32> to vector<16x128xf32>
    %159 = arith.addf %157, %158 : vector<16x128xf32>
    %cst_54 = arith.constant 0.000000e+00 : f32
    %160 = vector.broadcast %cst_54 : f32 to vector<16x128xf32>
    %161 = arith.maximumf %159, %160 : vector<16x128xf32>
    %c0_55 = arith.constant 0 : index
    %c112 = arith.constant 112 : index
    %162 = vector.load %arg2[%c0_55, %c112] : memref<24x128xf32, #tpu.memory_space<vmem>>, vector<8x16xf32>
    %163 = arith.truncf %162 : vector<8x16xf32> to vector<8x16xbf16>
    %c0_56 = arith.constant 0 : index
    %c109 = arith.constant 109 : index
    %164 = vector.load %arg2[%c0_56, %c109] : memref<24x128xf32, #tpu.memory_space<vmem>>, vector<8x1xf32>
    %165 = arith.truncf %161 : vector<16x128xf32> to vector<16x128xbf16>
    %cst_57 = arith.constant dense<0.000000e+00> : vector<8x128xf32>
    %166 = tpu.matmul %163, %165, %cst_57 {dimension_numbers = #tpu.dot_dimension_numbers<[1], [0], [0], [1], [0, 0, 1, 1], [], []>} : vector<8x16xbf16>, vector<16x128xbf16>, vector<8x128xf32> -> vector<8x128xf32>
    %167 = vector.broadcast %164 : vector<8x1xf32> to vector<8x128xf32>
    %168 = arith.addf %166, %167 : vector<8x128xf32>
    %169 = vector.extract_strided_slice %168 {offsets = [0, 0], sizes = [1, 128], strides = [1, 1]} : vector<8x128xf32> to vector<1x128xf32>
    %170 = arith.addf %3, %169 : vector<1x128xf32>
    %c0_58 = arith.constant 0 : index
    %c0_59 = arith.constant 0 : index
    %171 = vector.load %arg3[%c0_58, %c0_59] : memref<1x128xf32, #tpu.memory_space<vmem>>, vector<1x128xf32>
    tpu.vector_store %arg3[%c0_58, %c0_59], %170 {strides = array<i32>} : memref<1x128xf32, #tpu.memory_space<vmem>>, vector<1x128xf32>,
    return
  }
}

</mosaic_0001>

<bundles_post_ra>
// kernel: nn_optimizer_forward.1
= control target key start
LH: loop header
LB: loop body
LE: loop exit
PB: predicated region body
PF: predicated region fallthrough
CT: control target
= control target key end

     0   :  { %8 = vsyncpa [#allocation5], 0  ;;  %s975_s0 = inlined_call_operand.vmem [shape: f32[2], index: 0, kind: input, shape index: {}]   ;;  %s976_s1 = inlined_call_operand.hbm [shape: f32[3,128], index: 1, kind: input, shape index: {}]   ;;  %s977_s2 = inlined_call_operand.hbm [shape: f32[24,128], index: 2, kind: input, shape index: {}]   ;;  %s978_s3 = inlined_call_operand.hbm [shape: f32[1,128], index: 3, kind: output, shape index: {}]  }
   0x1   :  { %9 = vsyncpa [#allocation3], 0 }
   0x2   :  { %10 = vsyncpa [#allocation8], 0 }
   0x3   :  { %11 = vsyncpa [#allocation4], 0  ;;  %s18_s14 = sshll.u32 %s975_s0, 4  ;;  %s19_s14 = int_to_ptr.vmem [resolvable:$true] %s18_s14 }
   0x4   :  { %s744_s15 = scalar_lea.vmem %s19_s14, 16  ;;  %p749_p1 = scmp.lt.s32.totalorder %s19_s14, %s19_s14 }
   0x5   :  { %p745_p0 = scmp.ne.s32.totalorder %s19_s14, %s744_s15  ;;  %p750_p2 = scmp.lt.s32.totalorder %s744_s15, %s744_s15 }
   0x7   :  { %p751_p3 = por %p750_p2, %p749_p1 }
   0x9   :  { %p752_p4 = pnand %p751_p3, %p745_p0 }
   0xb   :  { %755 = shalt.err (!%p752_p4)
}
   0xc   :  { %s824_s16 = smov [#allocation2]   ;;  %s825_s17 = smov [#allocation6]  }
   0xd   :  { %21 = dma.vmem_to_smem %s19_s14, 16, %s824_s16, [#allocation5]  }
   0xe   :  { %s28_s18 = sshll.u32 %s825_s17, 4  ;;  %s826_s19 = smov [#allocation7]   ;;  %s29_s18 = int_to_ptr.vmem [resolvable:$true] %s28_s18 }
   0xf   :  { %s37_s20 = sshll.u32 %s826_s19, 4  ;;  %s764_s21 = scalar_lea.vmem %s29_s18, 64  ;;  %s38_s20 = int_to_ptr.vmem [resolvable:$true] %s37_s20 }
  0x10   :  { %p765_p5 = scmp.ne.s32.totalorder %s29_s18, %s764_s21  ;;  %p769_p6 = scmp.lt.s32.totalorder %s29_s18, %s29_s18 }
  0x11   :  { %p770_p7 = scmp.lt.s32.totalorder %s764_s21, %s764_s21 }
  0x13   :  { %p771_p8 = por %p770_p7, %p769_p6 }
  0x15   :  { %p772_p9 = pnand %p771_p8, %p765_p5 }
  0x17   :  { %775 = shalt.err (!%p772_p9)
}
  0x18   :  { %31 = dma.hbm_to_vmem [thread:$0]  %s976_s1, 64, %s29_s18, [#allocation3]  }
  0x19   :  { %s784_s23 = scalar_lea.vmem %s38_s20, 384  ;;  %p789_p11 = scmp.lt.s32.totalorder %s38_s20, %s38_s20 }
  0x1a   :  { %p785_p10 = scmp.ne.s32.totalorder %s38_s20, %s784_s23  ;;  %p790_p12 = scmp.lt.s32.totalorder %s784_s23, %s784_s23 }
  0x1c   :  { %p791_p13 = por %p790_p12, %p789_p11 }
  0x1e   :  { %p792_p0 = pnand %p791_p13, %p785_p10 }
  0x20   :  { %795 = shalt.err (!%p792_p0)
}
  0x21   :  { %s827_s24 = smov 128   ;;  %s828_s25 = smov 8  }
  0x22   :  { %43 = dma.hbm_to_vmem [thread:$0]  %s977_s2, 384, %s38_s20, [#allocation8], %s827_s24, %s827_s24, %s828_s25  }
  0x23   :  { %816 = dma.done.wait [#allocation5], 16  }
  0x24   :  { %817 = vsyncadd [#allocation5], 4294967280 }
  0x25   :  { %818 = dma.done.wait [#allocation3], 64  }
  0x26   :  { %819 = vsyncadd [#allocation3], 4294967232 }
  0x27   :  { %820 = dma.done.wait [#allocation8], 384  }
  0x28   :  { %821 = vsyncadd [#allocation8], 4294966912 }
  0x29   :  { %53 = sfence }
  0x2a   :  { %v876_v0 = vld [vmem:[#allocation6] sm:$0x7]  ;;  %vm64_vm0 = vcmask 1040384   ;;  %vm65_vm1 = vcmask 1041408   ;;  %vm67_vm2 = vcmask 1042432   ;;  %v829_v12 = vmov 0  }
  0x2b   :  { %v57_v1 = vrot.slane %v876_v0, 7  ;;  %v124_v3 = vmul.f32 %v876_v0, %v876_v0  ;;  %728 = vset.pattern.permute.xlu0 %v829_v12  ;;  %s160_s1 = sld [smem:[#allocation2]]  ;;  %v158_v14 = vlaneseq  ;;  %s830_s30 = smov 96   ;;  %v897_v49 = vld [vmem:[#allocation7] sm:$0xff]  ;;  %vm203_vm14 = vcmask 720512  }
  0x2c   :  { %s641_s2 = sld [smem:[#allocation2 + $0x1]]  ;;  %v196_v58 = vld [vmem:[#allocation7 + $0x8] sm:$0x1]  ;;  %s831_s4 = smov 40   ;;  %vm226_vm15 = vcmask 64512  }
  0x2d   :  { %v880_v2 = vsub.f32 %v876_v0, %v57_v1  ;;  %v159_v15 = vshrl.u32 %v158_v14, 7  ;;  %v248_v42 = vand.u32 127, %v158_v14  ;;  %v61_v14 = vld [vmem:[#allocation7 + $0x11] sm:$0x1]  ;;  %s835_s5 = smov 60   ;;  %s836_s6 = smov 64  }
  0x2e   :  { %s838_s7 = smov 112   ;;  %s841_s8 = smov 80  }
  0x2f   :  { %v125_v4 = vmul.f32 %v880_v2, %v880_v2  ;;  %v127_v5 = vrot.slane %v880_v2, 2  ;;  %v893_v18 = vsub.s32 0, %v159_v15  ;;  %v171_v19 = vsub.s32 1, %v159_v15  ;;  %s843_s9 = smov 16   ;;  %s845_s10 = smov [#allocation9]  }
  0x30   :  { %vm162_vm5 = vcmp.eq.s32.totalorder %v159_v15, 0  ;;  %vm168_vm6 = vcmp.eq.s32.totalorder %v159_v15, 1  ;;  %vm175_vm7 = vcmp.eq.s32.totalorder %v159_v15, 3  ;;  %vm180_vm8 = vcmp.eq.s32.totalorder %v159_v15, 4  ;;  %s629_s11 = sshll.u32 %s845_s10, 4  ;;  %s630_s11 = int_to_ptr.vmem [resolvable:$true] %s629_s11 }
  0x31   :  { %v129_v6 = vmul.f32 %v127_v5, %v876_v0  ;;  %v131_v7 = vrot.slane %v125_v4, 1  ;;  %s642_s28 = sadd.f32 -1.0, %s160_s1  ;;  %v191_v40 = vsub.s32 2, %v159_v15  ;;  %vm188_vm10 = vcmp.eq.s32.totalorder %v159_v15, 2  ;;  %s796_s12 = scalar_lea.vmem %s630_s11, 16 }
  0x32   :  { %s643_s29 = sadd.f32 -1.0, %s641_s2  ;;  %vm249_vm11 = vcmp.eq.s32.totalorder %v248_v42, 0  ;;  %vm250_vm12 = vcmp.eq.s32.totalorder %v248_v42, 2  ;;  %p797_p1 = scmp.ne.s32.totalorder %s630_s11, %s796_s12 }
  0x33   :  { %v134_v8 = vrot.slane %v129_v6, 6  ;;  %v136_v9 = vsel %vm64_vm0, %v124_v3, %v131_v7  ;;  %v177_v23 = vstv %s642_s28  ;;  %vm251_vm13 = vmor %vm249_vm11, %vm250_vm12  ;;  %v832_v6 = vmov 104   ;;  %s800_s13 = scalar_lea.vmem %s630_s11, 32  ;;  %p801_p2 = scmp.lt.s32.totalorder %s630_s11, %s630_s11 }
  0x34   :  { %v182_v26 = vstv %s643_s29  ;;  %v178_v29 = vsel %vm175_vm7, %v177_v23, 0.0  ;;  %729 = vset.pattern.permute.xlu1 %v832_v6  ;;  %v60_v23 = vld [vmem:[#allocation7 + $0x10] sm:$0x1]  ;;  %p802_p3 = scmp.lt.s32.totalorder %s800_s13, %s796_s12 }
  0x35   :  { %v137_v10 = vsel %vm65_vm1, %v136_v9, %v134_v8  ;;  %v183_v31 = vsel %vm180_vm8, %v182_v26, 0.0  ;;  %v260_v26 = vmul.f32 %v60_v23, %v876_v0 }
  0x36   :  { %v138_v11 = vsel %vm67_vm2, %v137_v10, 0.0  ;;  %p803_p4 = por %p802_p3, %p801_p2 }
  0x37   :  { %139 = vadd.xlane.f32.xlu0 %v138_v11 }
  0x38   :  { %p804_p5 = pnand %p803_p4, %p797_p1 }
  0xc0   :  { %v140_v13 = vpop.xlane.xlu0 %139 }
  0xc1   :  { %740 = vrsqrt.f32 %v140_v13  ;;  %vm143_vm3 = vcmp.eq.f32.partialorder %v140_v13, inf  ;;  %v146_v20 = vand.u32 2147483648, %v140_v13  ;;  %vm145_vm4 = vcmp.eq.f32.partialorder %v140_v13, 0.0 }
  0xce   :  { %v741_v16 = vpop.eup %740 }
  0xcf   :  { %v142_v17 = vmul.f32 %v741_v16, %v140_v13 }
  0xd1   :  { %v144_v21 = vsel %vm143_vm3, %v140_v13, %v142_v17  ;;  %vm238_vm3 = vcmask 818944  }
  0xd2   :  { %v147_v22 = vsel %vm145_vm4, %v146_v20, %v144_v21  ;;  %vm834_vm4 = vmmov 0  }
  0xd3   :  { %v166_v24 = vrot.slane %v147_v22, %v893_v18  ;;  %v172_v25 = vrot.slane %v147_v22, %v171_v19  ;;  %vm148_vm9 = vcmp.gt.f32.partialorder %v147_v22, 1e-10  ;;  %v62_v22 = vrot.slane %v876_v0, 1 }
  0xd4   :  { %v150_v33 = vsel %vm148_vm9, %v741_v16, 1.0  ;;  %v261_v16 = vmul.f32 %v127_v5, %v61_v14  ;;  %v267_v5 = vrot.slane %v880_v2, 7  ;;  %v922_v2 = vld [vmem:[#allocation7 + $0x8] sm:$0xff]  ;;  %v840_v14 = vmov 107  }
  0xd5   :  { %v167_v27 = vsel %vm162_vm5, %v166_v24, 0.0  ;;  %v173_v28 = vsel %vm168_vm6, %v172_v25, 0.0  ;;  %v152_v36 = vrot.slane %v150_v33, 6  ;;  %v155_v38 = vrot.slane %v150_v33, 7 }
  0xd6   :  { %v174_v30 = vadd.f32 %v173_v28, %v167_v27  ;;  %v252_v47 = vrot.slane %v150_v33, 1  ;;  %v263_v20 = vrot.slane %v261_v16, 7  ;;  %v833_v25 = vmov 0.0  }
  0xd7   :  { %v154_v37 = vmul.f32 %v152_v36, %v140_v13  ;;  %664 = vmatprep.subr.bf16.mxu0 %v833_v25  ;;  %666 = vmatprep.mubr.msk.bf16.mxu0 %vm834_vm4, %v833_v25  ;;  %v265_v27 = vrot.slane %v876_v0, 6  ;;  %v66_v28 = vsel %vm65_vm1, %v62_v22, 1.0 }
  0xd8   :  { %v179_v32 = vadd.f32 %v178_v29, %v174_v30  ;;  %v254_v48 = vsel %vm251_vm13, %v150_v33, %v252_v47  ;;  %670 = vmatprep.subr.bf16.mxu1 %v833_v25  ;;  %672 = vmatprep.mubr.msk.bf16.mxu1 %vm834_vm4, %v833_v25  ;;  %v68_v30 = vsel %vm67_vm2, %v66_v28, 0.0  ;;  %v842_v28 = vmov 108  }
  0xd9   :  { %v157_v39 = vmul.f32 %v155_v38, %v154_v37  ;;  %v72_v33 = vpack.c.bf16 %v68_v30, %v68_v30 }
  0xda   :  { %v184_v34 = vadd.f32 %v183_v31, %v179_v32  ;;  %v269_v31 = vsel %vm64_vm0, %v260_v26, %v263_v20  ;;  %vm76_vm0 = vcmask 31744  }
  0xdb   :  { %v192_v41 = vrot.slane %v157_v39, %v191_v40  ;;  %v81_v37 = vsel %vm65_vm1, %v72_v33, 0 }
  0xdc   :  { %v185_v35 = vadd.f32 1.0, %v184_v34  ;;  %v270_v34 = vsel %vm65_vm1, %v269_v31, %v265_v27  ;;  %665 = vmatpush3.bf16.msra.mxu0 %v81_v37 }
  0xdd   :  { %v193_v45 = vsel %vm188_vm10, %v192_v41, 0.0  ;;  %v271_v36 = vsel %vm67_vm2, %v270_v34, %v267_v5  ;;  %676 = vmatprep.subr.bf16.mxu0 %v833_v25  ;;  %v931_v41 = vpack.c.bf16 %v922_v2, %v897_v49 }
  0xde   :  { %742 = vlog2.f32 %v185_v35  ;;  %v283_v38 = vpack.c.bf16 %v271_v36, %v271_v36 }
  0xe0   :  { %v291_v40 = vsel %vm65_vm1, %v283_v38, 0  ;;  %vm347_vm1 = vcmask 130048  }
  0xe1   :  { %671 = vmatpush3.bf16.msra.mxu1 %v291_v40 }
  0xe2   :  { %682 = vmatprep.subr.bf16.mxu1 %v833_v25 }
  0xeb   :  { %v743_v43 = vpop.eup %742 }
  0xec   :  { %v187_v44 = vmul.f32 0.6931472, %v743_v43 }
  0xee   :  { %v194_v46 = vadd.f32 %v193_v45, %v187_v44 }
  0xf0   :  { %199 = vperm.xlu0 %728, %v194_v46  }
  0xf4   :  { %256 = vrot.lane.b32.xlu0 %v254_v48, %s830_s30 }
 0x16b   :  { %v200_v50 = vpop.permute.xlu0 %199 }
 0x16c   :  { %v202_v51 = vmul.f32 %v200_v50, %v897_v49  ;;  %v837_v50 = vmov 105  }
 0x16d   :  { %731 = vset.pattern.permute.xlu0 %v837_v50 }
 0x16e   :  { %v204_v52 = vsel %vm203_vm14, %v202_v51, 0.0 }
 0x16f   :  { %v205_v53 = vrot.slane %v204_v52, 4  ;;  %v257_v32 = vpop.permute.xlu0 %256 }
 0x171   :  { %v206_v54 = vadd.f32 %v205_v53, %v204_v52 }
 0x173   :  { %v207_v55 = vrot.slane %v206_v54, 2 }
 0x175   :  { %v208_v56 = vadd.f32 %v207_v55, %v206_v54 }
 0x177   :  { %v209_v57 = vrot.slane %v208_v56, 1 }
 0x179   :  { %v210_v59 = vadd.f32 %v209_v57, %v208_v56 }
 0x17b   :  { %v211_v60 = vadd.f32 %v210_v59, %v196_v58 }
 0x17d   :  { %v212_v61 = vmax.f32 %v211_v60, 0.0 }
 0x17f   :  { %v216_v62 = vrot.slane %v212_v61, %v893_v18 }
 0x181   :  { %218 = vrot.lane.b32.xlu1 %v216_v62, %s828_s25  ;;  %v839_v62 = vmov 106  }
 0x1f3   :  { %v219_v63 = vpop.permute.xlu1 %218 }
 0x1f4   :  { %v221_v1 = vmul.f32 %v219_v63, %v897_v49 }
 0x1f6   :  { %223 = vrot.lane.b32.xlu1 %v221_v1, %s831_s4 }
 0x268   :  { %v224_v3 = vpop.permute.xlu1 %223 }
 0x269   :  { %v227_v4 = vsel %vm226_vm15, %v224_v3, 0.0 }
 0x26a   :  { %228 = vadd.xlane.f32.xlu1 %v227_v4 }
 0x2f3   :  { %v229_v7 = vpop.xlane.xlu1 %228 }
 0x2f4   :  { %v230_v8 = vadd.f32 %v229_v7, %v897_v49 }
 0x2f6   :  { %v231_v9 = vmax.f32 %v230_v8, 0.0 }
 0x2f8   :  { %234 = vperm.xlu1 %729, %v231_v9  }
 0x2fc   :  { %730 = vset.pattern.permute.xlu1 %v837_v50 }
 0x2fd   :  { %339 = vperm.xlu1 %730, %v897_v49  }
 0x301   :  { %403 = vrot.lane.b32.xlu1 %v931_v41, %s838_s7 }
 0x302   :  { %732 = vset.pattern.permute.xlu1 %v839_v62 }
 0x305   :  { %396 = vperm.xlu1 %732, %v897_v49  }
 0x309   :  { %460 = vrot.lane.b32.xlu1 %v931_v41, %s830_s30 }
 0x30a   :  { %734 = vset.pattern.permute.xlu1 %v840_v14 }
 0x30d   :  { %453 = vperm.xlu1 %734, %v897_v49  }
 0x311   :  { %517 = vrot.lane.b32.xlu1 %v931_v41, %s841_s8 }
 0x312   :  { %736 = vset.pattern.permute.xlu1 %v842_v28 }
 0x315   :  { %510 = vperm.xlu1 %736, %v897_v49  }
 0x373   :  { %v235_v10 = vpop.permute.xlu1 %234 }
 0x374   :  { %v237_v11 = vmul.f32 %v235_v10, %v897_v49 }
 0x376   :  { %v239_v12 = vsel %vm238_vm3, %v237_v11, 0.0 }
 0x377   :  { %v240_v13 = vrot.slane %v239_v12, 4 }
 0x378   :  { %v340_v63 = vpop.permute.xlu1 %339 }
 0x379   :  { %v241_v15 = vadd.f32 %v240_v13, %v239_v12 }
 0x37b   :  { %v242_v17 = vrot.slane %v241_v15, 2 }
 0x37c   :  { %v404_v13 = vpop.permute.xlu1 %403 }
 0x37d   :  { %v243_v19 = vadd.f32 %v242_v17, %v241_v15 }
 0x37f   :  { %v244_v21 = vrot.slane %v243_v19, 1 }
 0x380   :  { %v397_v15 = vpop.permute.xlu1 %396 }
 0x381   :  { %v245_v24 = vadd.f32 %v244_v21, %v243_v19 }
 0x383   :  { %v246_v29 = vadd.f32 %v245_v24, %v196_v58 }
 0x384   :  { %v461_v5 = vpop.permute.xlu1 %460 }
 0x385   :  { %v259_v35 = vmul.f32 %v257_v32, %v246_v29  ;;  %v565_v29 = vpack.c.bf16 %v897_v49, %v897_v49 }
 0x387   :  { %v275_v39 = vrot.slane %v259_v35, %v893_v18  ;;  %573 = vrot.lane.b32.xlu1 %v565_v29, %s843_s9 }
 0x388   :  { %v454_v30 = vpop.permute.xlu1 %453 }
 0x389   :  { %277 = vrot.lane.b32.xlu0 %v275_v39, %s830_s30 }
 0x38c   :  { %v518_v40 = vpop.permute.xlu1 %517 }
 0x38d   :  { %74 = vrot.lane.b32.xlu0 %v931_v41, %s835_s5 }
 0x3fb   :  { %v278_v42 = vpop.permute.xlu0 %277 }
 0x3fc   :  { %v280_v18 = vmul.f32 %v278_v42, %v897_v49  ;;  %v281_v43 = vmul.f32 %v278_v42, %v922_v2 }
 0x3fe   :  { %v282_v44 = vpack.c.bf16 %v281_v43, %v280_v18 }
 0x3ff   :  { %v75_v45 = vpop.permute.xlu0 %74 }
 0x400   :  { %285 = vrot.lane.b32.xlu0 %v282_v44, %s836_s6  ;;  %667 = vmatmul.mubr.msk.bf16.vlgmr.msra.gmra.mxu0 %vm76_vm0, %v75_v45 }
 0x401   :  { %678 = vmatprep.mubr.msk.bf16.mxu0 %vm834_vm4, %v833_v25 }
 0x404   :  { %344 = vperm.xlu0 %731, %v922_v2  }
 0x408   :  { %733 = vset.pattern.permute.xlu0 %v839_v62 }
 0x409   :  { %400 = vperm.xlu0 %733, %v922_v2  }
 0x40d   :  { %735 = vset.pattern.permute.xlu0 %v840_v14 }
 0x40e   :  { %457 = vperm.xlu0 %735, %v922_v2  }
 0x412   :  { %737 = vset.pattern.permute.xlu0 %v842_v28 }
 0x413   :  { %514 = vperm.xlu0 %737, %v922_v2   ;;  %v844_v2 = vmov 109  }
 0x414   :  { %738 = vset.pattern.permute.xlu1 %v844_v2 }
 0x415   :  { %569 = vperm.xlu1 %738, %v897_v49  }
 0x417   :  { %739 = vset.pattern.permute.xlu0 %v844_v2 }
 0x472   :  { %v286_v46 = vpop.permute.xlu0 %285 }
 0x473   :  { %673 = vmatmul.mubr.msk.bf16.vlgmr.msra.gmra.mxu1 %vm76_vm0, %v286_v46 }
 0x474   :  { %684 = vmatprep.mubr.msk.bf16.mxu1 %vm834_vm4, %v833_v25 }
 0x47f   :  { %v345_v4 = vpop.permute.xlu0 %344 }
 0x484   :  { %v401_v19 = vpop.permute.xlu0 %400 }
 0x489   :  { %v458_v33 = vpop.permute.xlu0 %457 }
 0x48e   :  { %v515_v43 = vpop.permute.xlu0 %514 }
 0x4c0   :  { %v117_v47 = vpop.f32.mrf.mxu0 }
 0x4c2   :  { %v668_v48 = vpop.f32.mrf.mxu0 }
 0x4c4   :  { %v120_v51 = vpop.f32.mrf.mxu0 }
 0x4c6   :  { %v669_v52 = vpop.f32.mrf.mxu0 }
 0x533   :  { %v327_v53 = vpop.f32.mrf.mxu1 }
 0x534   :  { %v328_v55 = vadd.f32 %v327_v53, %v117_v47 }
 0x535   :  { %v674_v54 = vpop.f32.mrf.mxu1 }
 0x536   :  { %v334_v59 = vmax.f32 %v328_v55, 0.0 }
 0x537   :  { %v330_v56 = vpop.f32.mrf.mxu1 }
 0x538   :  { %v331_v57 = vadd.f32 %v330_v56, %v120_v51 }
 0x539   :  { %v675_v58 = vpop.f32.mrf.mxu1 }
 0x53a   :  { %v335_v60 = vmax.f32 %v331_v57, 0.0 }
 0x53c   :  { %v336_v61 = vpack.c.bf16 %v335_v60, %v334_v59 }
 0x53e   :  { %677 = vmatpush3.bf16.msra.mxu0 %v336_v61 }
 0x53f   :  { %688 = vmatprep.subr.bf16.mxu0 %v833_v25 }
 0x541   :  { %679 = vmatmul.mubr.msk.bf16.vlgmr.msra.gmra.mxu0 %vm347_vm1, %v931_v41  ;;  %v511_v41 = vpop.permute.xlu1 %510 }
 0x542   :  { %690 = vmatprep.mubr.msk.bf16.mxu0 %vm834_vm4, %v833_v25 }
 0x545   :  { %v574_v52 = vpop.permute.xlu1 %573 }
 0x549   :  { %v570_v53 = vpop.permute.xlu1 %569 }
 0x601   :  { %v385_v1 = vpop.f32.mrf.mxu0 }
 0x602   :  { %v386_v6 = vadd.f32 %v385_v1, %v340_v63 }
 0x603   :  { %v680_v3 = vpop.f32.mrf.mxu0 }
 0x604   :  { %v392_v10 = vmax.f32 %v386_v6, 0.0 }
 0x605   :  { %v388_v7 = vpop.f32.mrf.mxu0 }
 0x606   :  { %v389_v8 = vadd.f32 %v388_v7, %v345_v4 }
 0x607   :  { %v681_v9 = vpop.f32.mrf.mxu0 }
 0x608   :  { %v393_v11 = vmax.f32 %v389_v8, 0.0 }
 0x60a   :  { %v394_v12 = vpack.c.bf16 %v393_v11, %v392_v10 }
 0x60c   :  { %683 = vmatpush3.bf16.msra.mxu1 %v394_v12 }
 0x60d   :  { %694 = vmatprep.subr.bf16.mxu1 %v833_v25 }
 0x60f   :  { %685 = vmatmul.mubr.msk.bf16.vlgmr.msra.gmra.mxu1 %vm347_vm1, %v404_v13 }
 0x610   :  { %696 = vmatprep.mubr.msk.bf16.mxu1 %vm834_vm4, %v833_v25 }
 0x6cf   :  { %v442_v16 = vpop.f32.mrf.mxu1 }
 0x6d0   :  { %v443_v20 = vadd.f32 %v442_v16, %v397_v15 }
 0x6d1   :  { %v686_v17 = vpop.f32.mrf.mxu1 }
 0x6d2   :  { %v449_v24 = vmax.f32 %v443_v20, 0.0 }
 0x6d3   :  { %v445_v21 = vpop.f32.mrf.mxu1 }
 0x6d4   :  { %v446_v22 = vadd.f32 %v445_v21, %v401_v19 }
 0x6d5   :  { %v687_v23 = vpop.f32.mrf.mxu1 }
 0x6d6   :  { %v450_v26 = vmax.f32 %v446_v22, 0.0 }
 0x6d8   :  { %v451_v27 = vpack.c.bf16 %v450_v26, %v449_v24 }
 0x6da   :  { %689 = vmatpush3.bf16.msra.mxu0 %v451_v27 }
 0x6db   :  { %700 = vmatprep.subr.bf16.mxu0 %v833_v25 }
 0x6dd   :  { %691 = vmatmul.mubr.msk.bf16.vlgmr.msra.gmra.mxu0 %vm347_vm1, %v461_v5 }
 0x6de   :  { %702 = vmatprep.mubr.msk.bf16.mxu0 %vm834_vm4, %v833_v25 }
 0x79d   :  { %v499_v31 = vpop.f32.mrf.mxu0 }
 0x79e   :  { %v500_v34 = vadd.f32 %v499_v31, %v454_v30 }
 0x79f   :  { %v692_v32 = vpop.f32.mrf.mxu0 }
 0x7a0   :  { %v506_v37 = vmax.f32 %v500_v34, 0.0 }
 0x7a1   :  { %v502_v35 = vpop.f32.mrf.mxu0 }
 0x7a2   :  { %v503_v36 = vadd.f32 %v502_v35, %v458_v33 }
 0x7a3   :  { %v693_v25 = vpop.f32.mrf.mxu0 }
 0x7a4   :  { %v507_v38 = vmax.f32 %v503_v36, 0.0 }
 0x7a6   :  { %v508_v39 = vpack.c.bf16 %v507_v38, %v506_v37 }
 0x7a8   :  { %695 = vmatpush3.bf16.msra.mxu1 %v508_v39 }
 0x7ab   :  { %697 = vmatmul.mubr.msk.bf16.vlgmr.msra.gmra.mxu1 %vm347_vm1, %v518_v40 }
 0x86b   :  { %v556_v42 = vpop.f32.mrf.mxu1 }
 0x86c   :  { %v557_v44 = vadd.f32 %v556_v42, %v511_v41 }
 0x86d   :  { %v698_v18 = vpop.f32.mrf.mxu1 }
 0x86e   :  { %v563_v48 = vmax.f32 %v557_v44, 0.0 }
 0x86f   :  { %v559_v45 = vpop.f32.mrf.mxu1 }
 0x870   :  { %v560_v46 = vadd.f32 %v559_v45, %v515_v43 }
 0x871   :  { %v699_v47 = vpop.f32.mrf.mxu1 }
 0x872   :  { %v564_v50 = vmax.f32 %v560_v46, 0.0 }
 0x874   :  { %v566_v51 = vpack.c.bf16 %v564_v50, %v563_v48 }
 0x876   :  { %701 = vmatpush3.bf16.msra.mxu0 %v566_v51 }
 0x879   :  { %703 = vmatmul.mubr.msk.bf16.vlgmr.msra.gmra.mxu0 %vm347_vm1, %v574_v52 }
 0x939   :  { %v612_v54 = vpop.f32.mrf.mxu0 }
 0x93a   :  { %v613_v55 = vadd.f32 %v612_v54, %v570_v53 }
 0x93b   :  { %v704_v56 = vpop.f32.mrf.mxu0 }
 0x93c   :  { %v619_v49 = vrot.slane %v613_v55, 6 }
 0x93d   :  { %v615_v57 = vpop.f32.mrf.mxu0 }
 0x93e   :  { %v621_v58 = vadd.f32 %v619_v49, %v876_v0 }
 0x93f   :  { %v705_v59 = vpop.f32.mrf.mxu0 }
 0x940   :  { %622 = vst [vmem:[#allocation9 - $0x2] sm:$0x4] %v621_v58 }
 0x941   :  { %807 = shalt.err (!%p804_p5)
}
 0x942   :  { %632 = dma.vmem_to_hbm [thread:$0]  %s630_s11, 16, %s978_s3, [#allocation4]  }
 0x943   :  { %822 = dma.done.wait [#allocation4], 16  }
 0x944   :  { %823 = vsyncadd [#allocation4], 4294967280 }
 0x945   :  { %636 = vsyncpa [#allocation3], 1 }
 0x946   :  { %637 = vsyncpa [#allocation8], 1 }
 0x947   :  { %638 = vsyncpa [#allocation4], 1 }
 0x948   :  { %639 = vsyncpa [#allocation5], 1 }

</bundles_post_ra>
